<compile_context>
chip_gen: v7x
topology: tpu7x:2x2x1
jax: 0.10.0
libtpu: 0.0.40
codegen_flags: <defaults>
</compile_context>

<pallas_src>
import math

import jax
import jax.numpy as jnp
from jax.experimental import pallas as pl
from jax.experimental.pallas import tpu as pltpu


def _round_up(n, m):
    return ((n + m - 1) // m) * m


def angle_regression_kernel(w_ref, b_ref, two_pi_ref, pi_ref, x_ref, o_ref):
    # w_ref      : (4,)    SMEM  -- row of the (1, 4) PyTorch Linear weight
    # b_ref      : (1,)    SMEM  -- Linear bias
    # two_pi_ref : (1,)    SMEM  -- learnable scalar (2*pi at init)
    # pi_ref     : (1,)    SMEM  -- learnable scalar (pi at init)
    # x_ref      : (4, TB) VMEM  -- feature-major, lane-dense input tile
    # o_ref      : (1, TB) VMEM  -- lane-dense output tile
    y = (x_ref[0:1, :] * w_ref[0]
         + x_ref[1:2, :] * w_ref[1]
         + x_ref[2:3, :] * w_ref[2]
         + x_ref[3:4, :] * w_ref[3]
         + b_ref[0])                                       # (1, TB), pure VPU FMAs
    # Exact sigmoid: exp goes to the EUP slot, the divide is a plain VPU op.
    sig = 1.0 / (1.0 + jnp.exp(-y))
    # sigmoid(y) * 2*pi - pi  (maps (0, 1) -> (-pi, pi))
    o_ref[...] = sig * two_pi_ref[0] - pi_ref[0]


def angle_regression(x, w, b, two_pi, pi_, *, block_b=8192):
    """x: (B, 4) float32 -> (B,) float32, matching AngleRegression.forward."""
    B, F = x.shape
    assert F == 4

    # Lane-dense tile along B; cap the tile at the (128-padded) batch for small inputs.
    tb = min(block_b, _round_up(B, 128))
    Bp = _round_up(B, tb)

    # Feature-major, lane-dense layout: (4, Bp).  Pad rows are zeros and get sliced out,
    # so they never touch valid outputs.
    x_t = jnp.pad(x.astype(jnp.float32), ((0, Bp - B), (0, 0))).T

    w_s = jnp.reshape(w, (4,)).astype(jnp.float32)
    b_s = jnp.reshape(b, (1,)).astype(jnp.float32)
    two_pi_s = jnp.reshape(two_pi, (1,)).astype(jnp.float32)
    pi_s = jnp.reshape(pi_, (1,)).astype(jnp.float32)

    out = pl.pallas_call(
        angle_regression_kernel,
        out_shape=jax.ShapeDtypeStruct((1, Bp), jnp.float32),
        grid=(Bp // tb,),
        in_specs=[
            pl.BlockSpec(memory_space=pltpu.SMEM),        # w      (4,)
            pl.BlockSpec(memory_space=pltpu.SMEM),        # b      (1,)
            pl.BlockSpec(memory_space=pltpu.SMEM),        # two_pi (1,)
            pl.BlockSpec(memory_space=pltpu.SMEM),        # pi     (1,)
            pl.BlockSpec((4, tb), lambda i: (0, i)),      # x tile (4, TB)
        ],
        out_specs=pl.BlockSpec((1, tb), lambda i: (0, i)),
        compiler_params=pltpu.CompilerParams(
            dimension_semantics=("parallel",)),
    )(w_s, b_s, two_pi_s, pi_s, x_t)

    # PyTorch: x.squeeze(1) -> (B,)
    return out[0, :B]


def init_params(init_scale=1.0):
    """Deterministic stand-in for nn.init.orthogonal_(fc.weight, init_scale) + zero bias.

    For a (1, 4) weight, 'orthogonal' means a unit-norm row scaled by init_scale.
    """
    key = jax.random.PRNGKey(42)
    raw = jax.random.normal(key, (1, 4), dtype=jnp.float32)
    w = init_scale * raw / jnp.linalg.norm(raw, axis=1, keepdims=True)
    b = jnp.zeros((1,), dtype=jnp.float32)
    two_pi = jnp.array([2.0 * math.pi], dtype=jnp.float32)
    pi_ = jnp.array([math.pi], dtype=jnp.float32)
    return w, b, two_pi, pi_


if __name__ == "__main__":
    B = 8
    x = jax.random.normal(jax.random.PRNGKey(0), (B, 4), dtype=jnp.float32)
    w, b, two_pi, pi_ = init_params(init_scale=1.0)

    out = angle_regression(x, w, b, two_pi, pi_)
    out = jax.block_until_ready(out)

    # Reference in plain JAX (same math as the PyTorch forward).
    ref = (jax.nn.sigmoid(x @ w.T + b[None, :]) * two_pi[0] - pi_[0])[:, 0]
    assert out.shape == (B,)
    assert jnp.allclose(out, ref, atol=1e-5, rtol=1e-5)

    print("KERNEL_OK")
</pallas_src>

<mosaic_0001>
module attributes {stable_mosaic.version = 11 : i64} {
  func.func @angle_regression_kernel(%arg0: i32, %arg1: memref<4xf32, #tpu.memory_space<smem>>, %arg2: memref<1xf32, #tpu.memory_space<smem>>, %arg3: memref<1xf32, #tpu.memory_space<smem>>, %arg4: memref<1xf32, #tpu.memory_space<smem>>, %arg5: memref<4x128xf32, #tpu.memory_space<vmem>>, %arg6: memref<1x128xf32, #tpu.memory_space<vmem>>) attributes {dimension_semantics = [#tpu.dimension_semantics<parallel>], iteration_bounds = array<i64: 1>, scalar_prefetch = 0 : i64, scratch_operands = 0 : i64, tpu.core_type = #tpu.core_type<tc>, window_params = [{transform_indices = @transform_0, window_bounds = array<i64: 4>}, {transform_indices = @transform_1, window_bounds = array<i64: 1>}, {transform_indices = @transform_2, window_bounds = array<i64: 1>}, {transform_indices = @transform_3, window_bounds = array<i64: 1>}, {transform_indices = @transform_4, window_bounds = array<i64: 4, 128>}, {transform_indices = @transform_5, window_bounds = array<i64: 1, 128>}]} {
    %c0 = arith.constant 0 : index
    %c0_0 = arith.constant 0 : index
    %0 = vector.load %arg5[%c0, %c0_0] : memref<4x128xf32, #tpu.memory_space<vmem>>, vector<1x128xf32>
    %c0_1 = arith.constant 0 : index
    %1 = memref.load %arg1[%c0_1] : memref<4xf32, #tpu.memory_space<smem>>
    %2 = vector.broadcast %1 : f32 to vector<1x128xf32>
    %3 = arith.mulf %0, %2 : vector<1x128xf32>
    %c1 = arith.constant 1 : index
    %c0_2 = arith.constant 0 : index
    %4 = vector.load %arg5[%c1, %c0_2] : memref<4x128xf32, #tpu.memory_space<vmem>>, vector<1x128xf32>
    %c1_3 = arith.constant 1 : index
    %5 = memref.load %arg1[%c1_3] : memref<4xf32, #tpu.memory_space<smem>>
    %6 = vector.broadcast %5 : f32 to vector<1x128xf32>
    %7 = arith.mulf %4, %6 : vector<1x128xf32>
    %8 = arith.addf %3, %7 : vector<1x128xf32>
    %c2 = arith.constant 2 : index
    %c0_4 = arith.constant 0 : index
    %9 = vector.load %arg5[%c2, %c0_4] : memref<4x128xf32, #tpu.memory_space<vmem>>, vector<1x128xf32>
    %c2_5 = arith.constant 2 : index
    %10 = memref.load %arg1[%c2_5] : memref<4xf32, #tpu.memory_space<smem>>
    %11 = vector.broadcast %10 : f32 to vector<1x128xf32>
    %12 = arith.mulf %9, %11 : vector<1x128xf32>
    %13 = arith.addf %8, %12 : vector<1x128xf32>
    %c3 = arith.constant 3 : index
    %c0_6 = arith.constant 0 : index
    %14 = vector.load %arg5[%c3, %c0_6] : memref<4x128xf32, #tpu.memory_space<vmem>>, vector<1x128xf32>
    %c3_7 = arith.constant 3 : index
    %15 = memref.load %arg1[%c3_7] : memref<4xf32, #tpu.memory_space<smem>>
    %16 = vector.broadcast %15 : f32 to vector<1x128xf32>
    %17 = arith.mulf %14, %16 : vector<1x128xf32>
    %18 = arith.addf %13, %17 : vector<1x128xf32>
    %c0_8 = arith.constant 0 : index
    %19 = memref.load %arg2[%c0_8] : memref<1xf32, #tpu.memory_space<smem>>
    %20 = vector.broadcast %19 : f32 to vector<1x128xf32>
    %21 = arith.addf %18, %20 : vector<1x128xf32>
    %cst = arith.constant 0.000000e+00 : f32
    %22 = vector.broadcast %cst : f32 to vector<1x128xf32>
    %23 = arith.subf %22, %21 : vector<1x128xf32>
    %24 = math.exp %23 : vector<1x128xf32>
    %cst_9 = arith.constant 1.000000e+00 : f32
    %25 = vector.broadcast %cst_9 : f32 to vector<1x128xf32>
    %26 = arith.addf %25, %24 : vector<1x128xf32>
    %cst_10 = arith.constant 1.000000e+00 : f32
    %27 = vector.broadcast %cst_10 : f32 to vector<1x128xf32>
    %28 = arith.divf %27, %26 : vector<1x128xf32>
    %c0_11 = arith.constant 0 : index
    %29 = memref.load %arg3[%c0_11] : memref<1xf32, #tpu.memory_space<smem>>
    %30 = vector.broadcast %29 : f32 to vector<1x128xf32>
    %31 = arith.mulf %28, %30 : vector<1x128xf32>
    %c0_12 = arith.constant 0 : index
    %32 = memref.load %arg4[%c0_12] : memref<1xf32, #tpu.memory_space<smem>>
    %33 = vector.broadcast %32 : f32 to vector<1x128xf32>
    %34 = arith.subf %31, %33 : vector<1x128xf32>
    %c0_13 = arith.constant 0 : index
    %c0_14 = arith.constant 0 : index
    %35 = vector.load %arg6[%c0_13, %c0_14] : memref<1x128xf32, #tpu.memory_space<vmem>>, vector<1x128xf32>
    tpu.vector_store %arg6[%c0_13, %c0_14], %34 {strides = array<i32>} : memref<1x128xf32, #tpu.memory_space<vmem>>, vector<1x128xf32>,
    return
  }
  func.func @transform_0(%arg0: i32) -> i32 {
    %c0_i32 = arith.constant 0 : i32
    %c0_i32_0 = arith.constant 0 : i32
    return %c0_i32 : i32
  }
  func.func @transform_1(%arg0: i32) -> i32 {
    %c0_i32 = arith.constant 0 : i32
    %c0_i32_0 = arith.constant 0 : i32
    return %c0_i32 : i32
  }
  func.func @transform_2(%arg0: i32) -> i32 {
    %c0_i32 = arith.constant 0 : i32
    %c0_i32_0 = arith.constant 0 : i32
    return %c0_i32 : i32
  }
  func.func @transform_3(%arg0: i32) -> i32 {
    %c0_i32 = arith.constant 0 : i32
    %c0_i32_0 = arith.constant 0 : i32
    return %c0_i32 : i32
  }
  func.func @transform_4(%arg0: i32) -> (i32, i32) {
    %c0_i32 = arith.constant 0 : i32
    %c0_i32_0 = arith.constant 0 : i32
    return %c0_i32, %arg0 : i32, i32
  }
  func.func @transform_5(%arg0: i32) -> (i32, i32) {
    %c0_i32 = arith.constant 0 : i32
    %c0_i32_0 = arith.constant 0 : i32
    return %c0_i32, %arg0 : i32, i32
  }
}

</mosaic_0001>

<bundles_post_ra>
// kernel: tpu_custom_call.1
= control target key start
LH: loop header
LB: loop body
LE: loop exit
PB: predicated region body
PF: predicated region fallthrough
CT: control target
= control target key end

     0   :  { %13 = vsyncpa [#allocation7], 0  ;;  %s202_s0 = inlined_call_operand.vmem [shape: f32[4], index: 0, kind: input, shape index: {}]   ;;  %s203_s1 = inlined_call_operand.<no memory space> [shape: f32[1], index: 1, kind: input, shape index: {}]   ;;  %s204_s2 = inlined_call_operand.<no memory space> [shape: f32[1], index: 2, kind: input, shape index: {}]   ;;  %s205_s3 = inlined_call_operand.<no memory space> [shape: f32[1], index: 3, kind: input, shape index: {}]   ;;  %s206_s4 = inlined_call_operand.vmem [shape: f32[4,128], index: 4, kind: input, shape index: {}]   ;;  %s207_s5 = inlined_call_operand.hbm [shape: f32[1,128], index: 5, kind: output, shape index: {}]  }
   0x1   :  { %14 = vsyncpa [#allocation6], 0  ;;  %s21_s20 = sshll.u32 %s202_s0, 4  ;;  %s22_s20 = int_to_ptr.vmem [resolvable:$true] %s21_s20 }
   0x2   :  { %s96_s21 = scalar_lea.vmem %s22_s20, 16  ;;  %p101_p1 = scmp.lt.s32.totalorder %s22_s20, %s22_s20 }
   0x3   :  { %p97_p0 = scmp.ne.s32.totalorder %s22_s20, %s96_s21  ;;  %p102_p2 = scmp.lt.s32.totalorder %s96_s21, %s96_s21 }
   0x5   :  { %p103_p3 = por %p102_p2, %p101_p1 }
   0x7   :  { %p104_p4 = pnand %p103_p3, %p97_p0 }
   0x9   :  { %107 = shalt.err (!%p104_p4)
}
   0xa   :  { %s134_s22 = smov [#allocation5]  }
   0xb   :  { %24 = dma.vmem_to_smem %s22_s20, 16, %s134_s22, [#allocation7]  }
   0xc   :  { %130 = dma.done.wait [#allocation7], 16  }
   0xd   :  { %131 = vsyncadd [#allocation7], 4294967280 }
   0xe   :  { %36 = sfence }
   0xf   :  { %s38_s23 = sld [smem:[#allocation5]]  ;;  %s87_s24 = sld [smem:[#allocation5 + $0x1]]  ;;  %v37_v0 = vld [vmem:[%s206_s4] sm:$0x1]  ;;  %v41_v1 = vld [vmem:[%s206_s4 + $0x1] sm:$0x1]  ;;  %v57_v14 = vstv %s203_s1  ;;  %v66_v21 = vstv %s204_s2 }
  0x10   :  { %s88_s25 = sld [smem:[#allocation5 + $0x2]]  ;;  %s89_s26 = sld [smem:[#allocation5 + $0x3]]  ;;  %v46_v2 = vld [vmem:[%s206_s4 + $0x2] sm:$0x1]  ;;  %v51_v7 = vld [vmem:[%s206_s4 + $0x3] sm:$0x1]  ;;  %v69_v23 = vstv %s205_s3 }
  0x11   :  { %s135_s14 = smov [#allocation8]  }
  0x12   :  { %s78_s15 = sshll.u32 %s135_s14, 4  ;;  %s79_s15 = int_to_ptr.vmem [resolvable:$true] %s78_s15 }
  0x13   :  { %s108_s1 = scalar_lea.vmem %s79_s15, 16  ;;  %s112_s16 = scalar_lea.vmem %s79_s15, 32 }
  0x14   :  { %p109_p5 = scmp.ne.s32.totalorder %s79_s15, %s108_s1  ;;  %p113_p6 = scmp.lt.s32.totalorder %s79_s15, %s79_s15 }
  0x15   :  { %v39_v3 = vstv %s38_s23  ;;  %v43_v5 = vstv %s87_s24  ;;  %p114_p7 = scmp.lt.s32.totalorder %s112_s16, %s108_s1 }
  0x16   :  { %v40_v4 = vmul.f32 %v39_v3, %v37_v0  ;;  %v48_v6 = vstv %s88_s25  ;;  %v44_v8 = vmul.f32 %v43_v5, %v41_v1  ;;  %v53_v10 = vstv %s89_s26 }
  0x17   :  { %v49_v9 = vmul.f32 %v48_v6, %v46_v2  ;;  %v54_v12 = vmul.f32 %v53_v10, %v51_v7  ;;  %p115_p8 = por %p114_p7, %p113_p6 }
  0x18   :  { %v45_v11 = vadd.f32 %v44_v8, %v40_v4 }
  0x19   :  { %p116_p9 = pnand %p115_p8, %p109_p5 }
  0x1a   :  { %v50_v13 = vadd.f32 %v49_v9, %v45_v11 }
  0x1c   :  { %v55_v15 = vadd.f32 %v54_v12, %v50_v13 }
  0x1e   :  { %v58_v16 = vadd.f32 %v57_v14, %v55_v15 }
  0x20   :  { %v59_v17 = vsub.f32 0.0, %v58_v16 }
  0x22   :  { %v60_v18 = vmul.f32 1.442695, %v59_v17 }
  0x24   :  { %92 = vpow2.f32 %v60_v18 }
  0x2e   :  { %v93_v19 = vpop.eup %92 }
  0x2f   :  { %v62_v20 = vadd.f32 1.0, %v93_v19 }
  0x31   :  { %94 = vrcp.f32 %v62_v20 }
  0x3b   :  { %v95_v22 = vpop.eup %94 }
  0x3c   :  { %v67_v24 = vmul.f32 %v95_v22, %v66_v21 }
  0x3e   :  { %v70_v25 = vsub.f32 %v67_v24, %v69_v23 }
  0x40   :  { %71 = vst [vmem:[#allocation8] sm:$0x1] %v70_v25 }
  0x41   :  { %119 = shalt.err (!%p116_p9)
}
  0x42   :  { %s120_s18 = scalar_lea.hbm %s207_s5, 16 }
  0x43   :  { %p121_p10 = scmp.ne.s32.totalorder %s207_s5, %s120_s18  ;;  %p124_p11 = scmp.lt.u32.totalorder %s120_s18, %s207_s5 }
  0x45   :  { %p126_p12 = pnand %p124_p11, %p121_p10 }
  0x47   :  { %129 = shalt.err (!%p126_p12)
}
  0x48   :  { %81 = dma.vmem_to_hbm [thread:$0]  %s79_s15, 16, %s207_s5, [#allocation6]  }
  0x49   :  { %132 = dma.done.wait [#allocation6], 16  }
  0x4a   :  { %133 = vsyncadd [#allocation6], 4294967280 }
  0x4b   :  { %85 = vsyncpa [#allocation6], 1 }
  0x4c   :  { %86 = vsyncpa [#allocation7], 1 }

</bundles_post_ra>
